<compile_context>
chip_gen: v5e
topology: v5e:2x2
jax: 0.10.0
libtpu: 0.0.40
codegen_flags: <defaults>
</compile_context>

<pallas_src>
import functools

import jax
import jax.numpy as jnp
from jax import lax
from jax.experimental import pallas as pl
from jax.experimental.pallas import tpu as pltpu

SELU_ALPHA = 1.6732632423543772848170429916717
SELU_SCALE = 1.0507009873554804934193349852946
LN_EPS = 1e-5


def _round_up(x, m):
    return ((x + m - 1) // m) * m


def _pick_tm(m):
    """M-block size: multiple of 16 (bf16 sublane pack), capped at 256, and —
    whenever the batch allows it — at least 2 blocks so v7x megacore can split
    the 'parallel' grid axis across both TensorCores."""
    m16 = _round_up(max(m, 1), 16)
    tm = _round_up((m16 + 1) // 2, 16)
    return max(16, min(256, tm))


# ----------------------------------------------------------------------------
# Fused whole-MLP kernel: per layer  z = y @ W + b  (MXU, f32 acc) then
# optional SELU / LayerNorm epilogue; running activation stays on-chip.
# ----------------------------------------------------------------------------
def _mlp_kernel(*refs, layer_meta):
    """refs = (x_ref, w0_ref, b0_ref, ..., w{L-1}_ref, b{L-1}_ref, o_ref).

    layer_meta: tuple of (apply_selu, apply_ln, n_real, n_padded) per layer.
    The layer loop is a static Python loop (shapes differ per layer), so the
    whole MLP is a single fused trace; intermediates never touch HBM.
    """
    x_ref = refs[0]
    o_ref = refs[-1]
    n_layers = len(layer_meta)

    y = x_ref[...]  # bf16 activations
    for idx, (apply_selu, apply_ln, n_real, n_pad) in enumerate(layer_meta):
        w_ref = refs[1 + 2 * idx]
        b_ref = refs[2 + 2 * idx]

        z = jnp.dot(y, w_ref[...], preferred_element_type=jnp.float32)
        z = z + b_ref[...]  # (tm, Np) + (1, Np) broadcast, f32 epilogue

        if idx == n_layers - 1:
            o_ref[...] = z.astype(o_ref.dtype)
            break

        if apply_selu:
            # Outer SELU scale folded into both branches (saves one full-tile
            # VALU multiply). exp() runs on the EUP slot; overflow on the
            # discarded positive-input branch is safe because it's a select.
            # (exp(z)-1 instead of expm1 to stay on ops with guaranteed Mosaic
            # lowering; padded columns stay exactly 0 since SELU(0)==0.)
            z = jnp.where(z > 0.0, SELU_SCALE * z,
                          (SELU_SCALE * SELU_ALPHA) * (jnp.exp(z) - 1.0))

        if apply_ln:
            # nn.LayerNorm(normalized_shape=n_real, elementwise_affine=False):
            # statistics over the real (unpadded) feature columns only. The
            # iota/where mask path is skipped when the width is 128-aligned.
            inv_n = 1.0 / float(n_real)
            if n_pad == n_real:
                mean = jnp.sum(z, axis=-1, keepdims=True) * inv_n
                cent = z - mean
            else:
                mask = lax.broadcasted_iota(jnp.int32, z.shape, 1) < n_real
                zm = jnp.where(mask, z, 0.0)
                mean = jnp.sum(zm, axis=-1, keepdims=True) * inv_n
                cent = jnp.where(mask, z - mean, 0.0)
            var = jnp.sum(cent * cent, axis=-1, keepdims=True) * inv_n
            z = cent * lax.rsqrt(var + LN_EPS)  # padded cols remain 0

        y = z.astype(jnp.bfloat16)


@functools.partial(
    jax.jit, static_argnames=("active", "layer_norm", "n_reals")
)
def _mlp_forward(x, weights, biases, *, active, layer_norm, n_reals):
    """x: (M, K0) f32.  weights[i]: (Kp_i, Np_i) bf16 (pre-transposed/padded),
    biases[i]: (1, Np_i) f32, n_reals: real out_features per layer (static)."""
    m, k0 = x.shape
    n_layers = len(weights)
    tm = _pick_tm(m)
    mp = _round_up(m, tm)
    kp0 = weights[0].shape[0]
    np_last = weights[-1].shape[1]

    # Pad batch + first feature dim once; padded rows/cols are zero.
    x_p = jnp.pad(x, ((0, mp - m), (0, kp0 - k0))).astype(jnp.bfloat16)

    layer_meta = []
    in_specs = [pl.BlockSpec((tm, kp0), lambda i: (i, 0))]
    flat_params = []
    for idx in range(n_layers):
        w, b = weights[idx], biases[idx]
        kp, np_ = w.shape
        last = idx == n_layers - 1
        layer_meta.append(((not last) and active,
                           (not last) and layer_norm,
                           n_reals[idx], np_))
        # Constant index_map -> tile is resident across the whole M grid;
        # single-buffer it (double-buffering a constant block wastes VMEM,
        # which matters on v7x's 64 MiB).
        in_specs.append(pl.BlockSpec((kp, np_), lambda i: (0, 0),
                                     pipeline_mode=pl.Buffered(1)))
        in_specs.append(pl.BlockSpec((1, np_), lambda i: (0, 0),
                                     pipeline_mode=pl.Buffered(1)))
        flat_params += [w, b]

    # Explicit VMEM budget: x/out double-buffered, weights+biases single-
    # buffered, plus f32 + bf16 temporaries per intermediate activation.
    est = 2 * tm * kp0 * 2 + 2 * tm * np_last * 4
    for w in weights:
        kp, np_ = w.shape
        est += kp * np_ * 2 + np_ * 4 + tm * np_ * 6
    vmem_limit = int(min(max(32 << 20, 2 * est), 64 << 20))
    # TODO(synk): for very wide layers (weight tile > ~1/3 of VMEM) fall back to
    # per-layer K-tiled kernels (accumulator scratch) instead of this fused path.

    kernel = functools.partial(_mlp_kernel, layer_meta=tuple(layer_meta))
    out_p = pl.pallas_call(
        kernel,
        out_shape=jax.ShapeDtypeStruct((mp, np_last), jnp.float32),
        grid_spec=pltpu.PrefetchScalarGridSpec(
            num_scalar_prefetch=0,
            grid=(mp // tm,),  # 1-D grid over the batch only
            in_specs=in_specs,
            out_specs=pl.BlockSpec((tm, np_last), lambda i: (i, 0)),
        ),
        compiler_params=pltpu.CompilerParams(
            dimension_semantics=("parallel",),
            vmem_limit_bytes=vmem_limit,
        ),
    )(x_p, *flat_params)

    return out_p[:m, :n_reals[-1]]


# ----------------------------------------------------------------------------
# Host-side helpers
# ----------------------------------------------------------------------------
def prepare_params(params):
    """One-time conversion of PyTorch-layout params (W: (out,in) f32, b: (out,))
    into kernel layout: W^T zero-padded to (Kp, Np) bf16 and bias (1, Np) f32.
    Done once so forward never re-transposes / re-pads weights."""
    weights, biases, n_reals = [], [], []
    for w, b in params:
        out_f, in_f = w.shape
        kp, np_ = _round_up(in_f, 128), _round_up(out_f, 128)
        weights.append(
            jnp.pad(w.T, ((0, kp - in_f), (0, np_ - out_f))).astype(jnp.bfloat16))
        biases.append(
            jnp.pad(b.reshape(1, out_f), ((0, 0), (0, np_ - out_f)))
            .astype(jnp.float32))
        n_reals.append(out_f)
    return tuple(weights), tuple(biases), tuple(n_reals)


def custom_mlp_forward(x, prepared, *, active=True, layer_norm=False):
    """Mirrors CustomMLP.forward with pre-converted parameters."""
    weights, biases, n_reals = prepared
    return _mlp_forward(x, weights, biases, active=active,
                        layer_norm=layer_norm, n_reals=n_reals)


def make_params(key, layers, response_size):
    """Deterministic parameters with PyTorch nn.Linear default init."""
    sizes = list(layers) + [response_size]
    params = []
    for k in range(len(layers)):
        in_f, out_f = sizes[k], sizes[k + 1]
        key, kw, kb = jax.random.split(key, 3)
        bound = 1.0 / float(in_f) ** 0.5
        w = jax.random.uniform(kw, (out_f, in_f), jnp.float32, -bound, bound)
        b = jax.random.uniform(kb, (out_f,), jnp.float32, -bound, bound)
        params.append((w, b))
    return params


def reference_forward(x, params, *, active=True, layer_norm=False):
    """Pure-JAX/XLA reference replicating CustomMLP.forward exactly (f32)."""
    y = x
    out = None
    n = len(params)
    for idx, (w, b) in enumerate(params):
        z = y @ w.T + b
        if idx < n - 1:
            if active:
                z = jax.nn.selu(z)
            if layer_norm:
                mean = jnp.mean(z, axis=-1, keepdims=True)
                var = jnp.mean((z - mean) ** 2, axis=-1, keepdims=True)
                z = (z - mean) * lax.rsqrt(var + LN_EPS)
            y = z
        else:
            out = z
    return out


if __name__ == "__main__":
    key = jax.random.PRNGKey(0)
    k_x, k_p = jax.random.split(key)

    # Small shapes consistent with the module: batch=16, layers=[32, 64, 32],
    # response_size=16 -> Linear(32,64)+SELU, Linear(64,32)+SELU, Linear(32,16).
    batch = 16
    layers = [32, 64, 32]
    response_size = 16

    x = jax.random.normal(k_x, (batch, layers[0]), jnp.float32)
    params = make_params(k_p, layers, response_size)
    prepared = prepare_params(params)  # one-time weight re-layout

    # Exercise both the SELU-only path and the SELU + LayerNorm path.
    for active, layer_norm in ((True, False), (True, True)):
        out = jax.block_until_ready(
            custom_mlp_forward(x, prepared, active=active, layer_norm=layer_norm))
        assert out.shape == (batch, response_size), out.shape
        ref = jax.block_until_ready(
            reference_forward(x, params, active=active, layer_norm=layer_norm))
        # bf16 matmul inputs with f32 accumulation vs. exact f32 reference.
        err = float(jnp.max(jnp.abs(out - ref)))
        assert jnp.allclose(out, ref, rtol=5e-2, atol=5e-2), err

    print("KERNEL_OK")
</pallas_src>

<mosaic_0001>
module attributes {stable_mosaic.version = 11 : i64} {
  func.func @_mlp_kernel(%arg0: i32, %arg1: memref<16x128xbf16, #tpu.memory_space<vmem>>, %arg2: memref<128x128xbf16, #tpu.memory_space<vmem>>, %arg3: memref<1x128xf32, #tpu.memory_space<vmem>>, %arg4: memref<128x128xbf16, #tpu.memory_space<vmem>>, %arg5: memref<1x128xf32, #tpu.memory_space<vmem>>, %arg6: memref<128x128xbf16, #tpu.memory_space<vmem>>, %arg7: memref<1x128xf32, #tpu.memory_space<vmem>>, %arg8: memref<16x128xf32, #tpu.memory_space<vmem>>) attributes {dimension_semantics = [#tpu.dimension_semantics<parallel>], iteration_bounds = array<i64: 1>, scalar_prefetch = 0 : i64, scratch_operands = 0 : i64, tpu.core_type = #tpu.core_type<tc>, window_params = [{transform_indices = @transform_0, window_bounds = array<i64: 16, 128>}, {pipeline_mode = #tpu.pipeline_mode<synchronous>, transform_indices = @transform_1, window_bounds = array<i64: 128, 128>}, {pipeline_mode = #tpu.pipeline_mode<synchronous>, transform_indices = @transform_2, window_bounds = array<i64: 1, 128>}, {pipeline_mode = #tpu.pipeline_mode<synchronous>, transform_indices = @transform_3, window_bounds = array<i64: 128, 128>}, {pipeline_mode = #tpu.pipeline_mode<synchronous>, transform_indices = @transform_4, window_bounds = array<i64: 1, 128>}, {pipeline_mode = #tpu.pipeline_mode<synchronous>, transform_indices = @transform_5, window_bounds = array<i64: 128, 128>}, {pipeline_mode = #tpu.pipeline_mode<synchronous>, transform_indices = @transform_6, window_bounds = array<i64: 1, 128>}, {transform_indices = @transform_7, window_bounds = array<i64: 16, 128>}]} {
    %c0 = arith.constant 0 : index
    %c0_0 = arith.constant 0 : index
    %0 = vector.load %arg1[%c0, %c0_0] : memref<16x128xbf16, #tpu.memory_space<vmem>>, vector<16x128xbf16>
    %c0_1 = arith.constant 0 : index
    %c0_2 = arith.constant 0 : index
    %1 = vector.load %arg2[%c0_1, %c0_2] : memref<128x128xbf16, #tpu.memory_space<vmem>>, vector<128x128xbf16>
    %cst = arith.constant dense<0.000000e+00> : vector<16x128xf32>
    %2 = tpu.matmul %0, %1, %cst {dimension_numbers = #tpu.dot_dimension_numbers<[1], [0], [0], [1], [0, 0, 1, 1], [], []>} : vector<16x128xbf16>, vector<128x128xbf16>, vector<16x128xf32> -> vector<16x128xf32>
    %c0_3 = arith.constant 0 : index
    %c0_4 = arith.constant 0 : index
    %3 = vector.load %arg3[%c0_3, %c0_4] : memref<1x128xf32, #tpu.memory_space<vmem>>, vector<1x128xf32>
    %4 = vector.broadcast %3 : vector<1x128xf32> to vector<16x128xf32>
    %5 = arith.addf %2, %4 : vector<16x128xf32>
    %cst_5 = arith.constant 0.000000e+00 : f32
    %6 = vector.broadcast %cst_5 : f32 to vector<16x128xf32>
    %7 = arith.cmpf ogt, %5, %6 : vector<16x128xf32>
    %cst_6 = arith.constant 1.05070102 : f32
    %8 = vector.broadcast %cst_6 : f32 to vector<16x128xf32>
    %9 = arith.mulf %8, %5 : vector<16x128xf32>
    %10 = math.exp %5 : vector<16x128xf32>
    %cst_7 = arith.constant 1.000000e+00 : f32
    %11 = vector.broadcast %cst_7 : f32 to vector<16x128xf32>
    %12 = arith.subf %10, %11 : vector<16x128xf32>
    %cst_8 = arith.constant 1.75809932 : f32
    %13 = vector.broadcast %cst_8 : f32 to vector<16x128xf32>
    %14 = arith.mulf %13, %12 : vector<16x128xf32>
    %15 = arith.select %7, %9, %14 : vector<16x128xi1>, vector<16x128xf32>
    %16 = arith.truncf %15 : vector<16x128xf32> to vector<16x128xbf16>
    %c0_9 = arith.constant 0 : index
    %c0_10 = arith.constant 0 : index
    %17 = vector.load %arg4[%c0_9, %c0_10] : memref<128x128xbf16, #tpu.memory_space<vmem>>, vector<128x128xbf16>
    %cst_11 = arith.constant dense<0.000000e+00> : vector<16x128xf32>
    %18 = tpu.matmul %16, %17, %cst_11 {dimension_numbers = #tpu.dot_dimension_numbers<[1], [0], [0], [1], [0, 0, 1, 1], [], []>} : vector<16x128xbf16>, vector<128x128xbf16>, vector<16x128xf32> -> vector<16x128xf32>
    %c0_12 = arith.constant 0 : index
    %c0_13 = arith.constant 0 : index
    %19 = vector.load %arg5[%c0_12, %c0_13] : memref<1x128xf32, #tpu.memory_space<vmem>>, vector<1x128xf32>
    %20 = vector.broadcast %19 : vector<1x128xf32> to vector<16x128xf32>
    %21 = arith.addf %18, %20 : vector<16x128xf32>
    %cst_14 = arith.constant 0.000000e+00 : f32
    %22 = vector.broadcast %cst_14 : f32 to vector<16x128xf32>
    %23 = arith.cmpf ogt, %21, %22 : vector<16x128xf32>
    %cst_15 = arith.constant 1.05070102 : f32
    %24 = vector.broadcast %cst_15 : f32 to vector<16x128xf32>
    %25 = arith.mulf %24, %21 : vector<16x128xf32>
    %26 = math.exp %21 : vector<16x128xf32>
    %cst_16 = arith.constant 1.000000e+00 : f32
    %27 = vector.broadcast %cst_16 : f32 to vector<16x128xf32>
    %28 = arith.subf %26, %27 : vector<16x128xf32>
    %cst_17 = arith.constant 1.75809932 : f32
    %29 = vector.broadcast %cst_17 : f32 to vector<16x128xf32>
    %30 = arith.mulf %29, %28 : vector<16x128xf32>
    %31 = arith.select %23, %25, %30 : vector<16x128xi1>, vector<16x128xf32>
    %32 = arith.truncf %31 : vector<16x128xf32> to vector<16x128xbf16>
    %c0_18 = arith.constant 0 : index
    %c0_19 = arith.constant 0 : index
    %33 = vector.load %arg6[%c0_18, %c0_19] : memref<128x128xbf16, #tpu.memory_space<vmem>>, vector<128x128xbf16>
    %cst_20 = arith.constant dense<0.000000e+00> : vector<16x128xf32>
    %34 = tpu.matmul %32, %33, %cst_20 {dimension_numbers = #tpu.dot_dimension_numbers<[1], [0], [0], [1], [0, 0, 1, 1], [], []>} : vector<16x128xbf16>, vector<128x128xbf16>, vector<16x128xf32> -> vector<16x128xf32>
    %c0_21 = arith.constant 0 : index
    %c0_22 = arith.constant 0 : index
    %35 = vector.load %arg7[%c0_21, %c0_22] : memref<1x128xf32, #tpu.memory_space<vmem>>, vector<1x128xf32>
    %36 = vector.broadcast %35 : vector<1x128xf32> to vector<16x128xf32>
    %37 = arith.addf %34, %36 : vector<16x128xf32>
    %c0_23 = arith.constant 0 : index
    %c0_24 = arith.constant 0 : index
    %38 = vector.load %arg8[%c0_23, %c0_24] : memref<16x128xf32, #tpu.memory_space<vmem>>, vector<16x128xf32>
    tpu.vector_store %arg8[%c0_23, %c0_24], %37 {strides = array<i32>} : memref<16x128xf32, #tpu.memory_space<vmem>>, vector<16x128xf32>,
    return
  }
  func.func @transform_0(%arg0: i32) -> (i32, i32) {
    %c0_i32 = arith.constant 0 : i32
    %c0_i32_0 = arith.constant 0 : i32
    return %arg0, %c0_i32 : i32, i32
  }
  func.func @transform_1(%arg0: i32) -> (i32, i32) {
    %c0_i32 = arith.constant 0 : i32
    %c0_i32_0 = arith.constant 0 : i32
    %c0_i32_1 = arith.constant 0 : i32
    return %c0_i32, %c0_i32_0 : i32, i32
  }
  func.func @transform_2(%arg0: i32) -> (i32, i32) {
    %c0_i32 = arith.constant 0 : i32
    %c0_i32_0 = arith.constant 0 : i32
    %c0_i32_1 = arith.constant 0 : i32
    return %c0_i32, %c0_i32_0 : i32, i32
  }
  func.func @transform_3(%arg0: i32) -> (i32, i32) {
    %c0_i32 = arith.constant 0 : i32
    %c0_i32_0 = arith.constant 0 : i32
    %c0_i32_1 = arith.constant 0 : i32
    return %c0_i32, %c0_i32_0 : i32, i32
  }
  func.func @transform_4(%arg0: i32) -> (i32, i32) {
    %c0_i32 = arith.constant 0 : i32
    %c0_i32_0 = arith.constant 0 : i32
    %c0_i32_1 = arith.constant 0 : i32
    return %c0_i32, %c0_i32_0 : i32, i32
  }
  func.func @transform_5(%arg0: i32) -> (i32, i32) {
    %c0_i32 = arith.constant 0 : i32
    %c0_i32_0 = arith.constant 0 : i32
    %c0_i32_1 = arith.constant 0 : i32
    return %c0_i32, %c0_i32_0 : i32, i32
  }
  func.func @transform_6(%arg0: i32) -> (i32, i32) {
    %c0_i32 = arith.constant 0 : i32
    %c0_i32_0 = arith.constant 0 : i32
    %c0_i32_1 = arith.constant 0 : i32
    return %c0_i32, %c0_i32_0 : i32, i32
  }
  func.func @transform_7(%arg0: i32) -> (i32, i32) {
    %c0_i32 = arith.constant 0 : i32
    %c0_i32_0 = arith.constant 0 : i32
    return %arg0, %c0_i32 : i32, i32
  }
}

</mosaic_0001>

<bundles_post_ra>
// kernel: _mlp_forward.1
= control target key start
LH: loop header
LB: loop body
LE: loop exit
PB: predicated region body
PF: predicated region fallthrough
CT: control target
= control target key end

     0   :  { %12 = vsyncpa [#allocation3], 0  ;;  %s702_s0 = inlined_call_operand.vmem [shape: bf16[16,128], index: 0, kind: input, shape index: {}]   ;;  %s703_s1 = inlined_call_operand.hbm [shape: bf16[128,128], index: 1, kind: input, shape index: {}]   ;;  %s704_s2 = inlined_call_operand.vmem [shape: f32[1,128], index: 2, kind: input, shape index: {}]   ;;  %s705_s3 = inlined_call_operand.hbm [shape: bf16[128,128], index: 3, kind: input, shape index: {}]   ;;  %s706_s4 = inlined_call_operand.vmem [shape: f32[1,128], index: 4, kind: input, shape index: {}]   ;;  %s707_s5 = inlined_call_operand.hbm [shape: bf16[128,128], index: 5, kind: input, shape index: {}]   ;;  %s708_s6 = inlined_call_operand.vmem [shape: f32[1,128], index: 6, kind: input, shape index: {}]   ;;  %s709_s7 = inlined_call_operand.hbm [shape: f32[16,128], index: 7, kind: output, shape index: {}]  }
   0x1   :  { %13 = vsyncpa [#allocation6], 0 }
   0x2   :  { %14 = vsyncpa [#allocation4], 0  ;;  %s36_s26 = sshll.u32 %s705_s3, 4  ;;  %s630_s27 = smov [#allocation5]   ;;  %s37_s26 = int_to_ptr.hbm [resolvable:$true] %s36_s26 }
   0x3   :  { %s38_s28 = sshll.u32 %s630_s27, 4  ;;  %s21_s8 = sshll.u32 %s703_s1, 4  ;;  %s39_s28 = int_to_ptr.vmem [resolvable:$true] %s38_s28  ;;  %s22_s8 = int_to_ptr.hbm [resolvable:$true] %s21_s8 }
   0x4   :  { %s631_s9 = smov 64   ;;  %s632_s10 = smov 4  }
   0x5   :  { %44 = dma.hbm_to_vmem [thread:$0]  %s37_s26, 1024, %s39_s28, [#allocation6], %s631_s9, %s631_s9, %s632_s10  }
   0x6   :  { %s633_s11 = smov [#allocation2]   ;;  %s51_s15 = sshll.u32 %s707_s5, 4  ;;  %s52_s15 = int_to_ptr.hbm [resolvable:$true] %s51_s15 }
   0x7   :  { %s23_s12 = sshll.u32 %s633_s11, 4  ;;  %s634_s3 = smov [#allocation7]   ;;  %s24_s12 = int_to_ptr.vmem [resolvable:$true] %s23_s12 }
   0x8   :  { %29 = dma.hbm_to_vmem [thread:$0]  %s22_s8, 1024, %s24_s12, [#allocation3], %s631_s9, %s631_s9, %s632_s10  }
   0x9   :  { %s53_s16 = sshll.u32 %s634_s3, 4  ;;  %s54_s16 = int_to_ptr.vmem [resolvable:$true] %s53_s16 }
   0xa   :  { %59 = dma.hbm_to_vmem [thread:$0]  %s52_s15, 1024, %s54_s16, [#allocation6], %s631_s9, %s631_s9, %s632_s10  }
   0xb   :  { %624 = dma.done.wait [#allocation3], 1024  }
   0xc   :  { %625 = vsyncadd [#allocation3], 4294966272 }
   0xd   :  { %626 = dma.done.wait [#allocation6], 2048  }
   0xe   :  { %627 = vsyncadd [#allocation6], 4294965248  ;;  %v492_v0 = vld [vmem:[#allocation2 + $0x38] sm:$0xff]  ;;  %v491_v1 = vld [vmem:[#allocation2 + $0x30] sm:$0xff]  ;;  %s635_s20 = smov [#allocation8]   ;;  %s366_s24 = sshll.u32 %s709_s7, 4  ;;  %s367_s24 = int_to_ptr.hbm [resolvable:$true] %s366_s24 }
   0xf   :  { %150 = vmatpush.bf16.msra.mxu0 %v492_v0  ;;  %v500_v2 = vld [vmem:[#allocation5 + $0x38] sm:$0xff]  ;;  %v490_v3 = vld [vmem:[#allocation2 + $0x28] sm:$0xff]  ;;  %v489_v4 = vld [vmem:[#allocation2 + $0x20] sm:$0xff]  ;;  %s364_s21 = sshll.u32 %s635_s20, 4  ;;  %s636_s25 = smov 128   ;;  %s365_s21 = int_to_ptr.vmem [resolvable:$true] %s364_s21 }
  0x10   :  { %247 = vmatpush.bf16.msra.mxu1 %v500_v2  ;;  %v488_v5 = vld [vmem:[#allocation2 + $0x18] sm:$0xff]  ;;  %v487_v6 = vld [vmem:[#allocation2 + $0x10] sm:$0xff]  ;;  %v486_v7 = vld [vmem:[#allocation2 + $0x8] sm:$0xff]  ;;  %s637_s26 = smov 8  }
  0x11   :  { %v485_v8 = vld [vmem:[#allocation2] sm:$0xff]  ;;  %v499_v10 = vld [vmem:[#allocation5 + $0x30] sm:$0xff]  ;;  %v498_v11 = vld [vmem:[#allocation5 + $0x28] sm:$0xff] }
  0x12   :  { %v484_v9 = vld [vmem:[%s702_s0] sm:$0xff]  ;;  %v496_v13 = vld [vmem:[#allocation5 + $0x18] sm:$0xff]  ;;  %v495_v14 = vld [vmem:[#allocation5 + $0x10] sm:$0xff] }
  0x13   :  { %151 = vmatpush.bf16.msra.mxu0 %v491_v1  ;;  %v497_v12 = vld [vmem:[#allocation5 + $0x20] sm:$0xff]  ;;  %v494_v15 = vld [vmem:[#allocation5 + $0x8] sm:$0xff]  ;;  %v508_v17 = vld [vmem:[#allocation7 + $0x38] sm:$0xff] }
  0x14   :  { %248 = vmatpush.bf16.msra.mxu1 %v499_v10  ;;  %v493_v16 = vld [vmem:[#allocation5] sm:$0xff]  ;;  %344 = vmatpush.bf16.msra.mxu2 %v508_v17  ;;  %v507_v36 = vld [vmem:[#allocation7 + $0x30] sm:$0xff]  ;;  %v506_v37 = vld [vmem:[#allocation7 + $0x28] sm:$0xff] }
  0x15   :  { %v517_v18 = vld [vmem:[%s704_s2] ss:$0 sm:$0xff]  ;;  %v504_v39 = vld [vmem:[#allocation7 + $0x18] sm:$0xff]  ;;  %v503_v40 = vld [vmem:[#allocation7 + $0x10] sm:$0xff] }
  0x16   :  { %v505_v38 = vld [vmem:[#allocation7 + $0x20] sm:$0xff]  ;;  %v502_v41 = vld [vmem:[#allocation7 + $0x8] sm:$0xff] }
  0x17   :  { %152 = vmatpush.bf16.msra.mxu0 %v490_v3  ;;  %v501_v42 = vld [vmem:[#allocation7] sm:$0xff] }
  0x18   :  { %249 = vmatpush.bf16.msra.mxu1 %v498_v11  ;;  %345 = vmatpush.bf16.msra.mxu2 %v507_v36  ;;  %v518_v43 = vld [vmem:[%s706_s4] ss:$0 sm:$0xff] }
  0x19   :  { %v519_v61 = vld [vmem:[%s708_s6] ss:$0 sm:$0xff] }
  0x1b   :  { %153 = vmatpush.bf16.msra.mxu0 %v489_v4 }
  0x1c   :  { %250 = vmatpush.bf16.msra.mxu1 %v497_v12  ;;  %346 = vmatpush.bf16.msra.mxu2 %v506_v37 }
  0x1f   :  { %154 = vmatpush.bf16.msra.mxu0 %v488_v5 }
  0x20   :  { %251 = vmatpush.bf16.msra.mxu1 %v496_v13  ;;  %347 = vmatpush.bf16.msra.mxu2 %v505_v38 }
  0x23   :  { %155 = vmatpush.bf16.msra.mxu0 %v487_v6 }
  0x24   :  { %252 = vmatpush.bf16.msra.mxu1 %v495_v14  ;;  %348 = vmatpush.bf16.msra.mxu2 %v504_v39 }
  0x27   :  { %156 = vmatpush.bf16.msra.mxu0 %v486_v7 }
  0x28   :  { %253 = vmatpush.bf16.msra.mxu1 %v494_v15  ;;  %349 = vmatpush.bf16.msra.mxu2 %v503_v40 }
  0x2b   :  { %157 = vmatpush.bf16.msra.mxu0 %v485_v8 }
  0x2c   :  { %254 = vmatpush.bf16.msra.mxu1 %v493_v16  ;;  %350 = vmatpush.bf16.msra.mxu2 %v502_v41 }
  0x2e   :  { %158 = vmatmul.bf16.vlgmr.msra.gmra.mxu0 %v484_v9 }
  0x30   :  { %351 = vmatpush.bf16.msra.mxu2 %v501_v42 }
  0xab   :  { %v159_v19 = vpop.f32.mrf.mxu0 }
  0xac   :  { %v160_v20 = vadd.f32 %v517_v18, %v159_v19 }
  0xae   :  { %v168_v21 = vmul.f32 1.442695, %v160_v20  ;;  %v166_v30 = vmul.f32 1.050701, %v160_v20  ;;  %vm164_vm0 = vcmp.gt.f32.partialorder %v160_v20, 0.0 }
  0xb0   :  { %520 = vpow2.f32 %v168_v21 }
  0xb3   :  { %v161_v22 = vpop.f32.mrf.mxu0 }
  0xb4   :  { %v162_v23 = vadd.f32 %v517_v18, %v161_v22 }
  0xb6   :  { %v170_v24 = vmul.f32 1.442695, %v162_v23  ;;  %v521_v25 = vpop.eup %520  ;;  %v167_v31 = vmul.f32 1.050701, %v162_v23  ;;  %vm165_vm1 = vcmp.gt.f32.partialorder %v162_v23, 0.0 }
  0xb7   :  { %v416_v26 = vadd.f32 -1.0, %v521_v25 }
  0xb8   :  { %522 = vpow2.f32 %v170_v24 }
  0xb9   :  { %v174_v29 = vmul.f32 1.7580993, %v416_v26 }
  0xbb   :  { %v176_v33 = vsel %vm164_vm0, %v166_v30, %v174_v29 }
  0xbe   :  { %v523_v27 = vpop.eup %522 }
  0xbf   :  { %v417_v28 = vadd.f32 -1.0, %v523_v27 }
  0xc1   :  { %v175_v32 = vmul.f32 1.7580993, %v417_v28 }
  0xc3   :  { %v177_v34 = vsel %vm165_vm1, %v167_v31, %v175_v32 }
  0xc4   :  { %v178_v35 = vpack.c.bf16 %v177_v34, %v176_v33 }
  0xc6   :  { %255 = vmatmul.bf16.vlgmr.msra.gmra.mxu1 %v178_v35 }
 0x143   :  { %v256_v44 = vpop.f32.mrf.mxu1 }
 0x144   :  { %v257_v45 = vadd.f32 %v518_v43, %v256_v44 }
 0x146   :  { %v265_v46 = vmul.f32 1.442695, %v257_v45  ;;  %v263_v55 = vmul.f32 1.050701, %v257_v45  ;;  %vm261_vm2 = vcmp.gt.f32.partialorder %v257_v45, 0.0 }
 0x148   :  { %524 = vpow2.f32 %v265_v46 }
 0x14b   :  { %v258_v47 = vpop.f32.mrf.mxu1 }
 0x14c   :  { %v259_v48 = vadd.f32 %v518_v43, %v258_v47 }
 0x14e   :  { %v267_v49 = vmul.f32 1.442695, %v259_v48  ;;  %v525_v50 = vpop.eup %524  ;;  %v264_v56 = vmul.f32 1.050701, %v259_v48  ;;  %vm262_vm3 = vcmp.gt.f32.partialorder %v259_v48, 0.0 }
 0x14f   :  { %v450_v51 = vadd.f32 -1.0, %v525_v50 }
 0x150   :  { %526 = vpow2.f32 %v267_v49 }
 0x151   :  { %v271_v54 = vmul.f32 1.7580993, %v450_v51 }
 0x153   :  { %v273_v58 = vsel %vm261_vm2, %v263_v55, %v271_v54 }
 0x156   :  { %v527_v52 = vpop.eup %526 }
 0x157   :  { %v451_v53 = vadd.f32 -1.0, %v527_v52 }
 0x159   :  { %v272_v57 = vmul.f32 1.7580993, %v451_v53 }
 0x15b   :  { %v274_v59 = vsel %vm262_vm3, %v264_v56, %v272_v57 }
 0x15c   :  { %v275_v60 = vpack.c.bf16 %v274_v59, %v273_v58 }
 0x15e   :  { %352 = vmatmul.bf16.vlgmr.msra.gmra.mxu2 %v275_v60 }
 0x1e1   :  { %v353_v62 = vpop.f32.mrf.mxu2 }
 0x1e2   :  { %v354_v63 = vadd.f32 %v519_v61, %v353_v62 }
 0x1e4   :  { %358 = vst [vmem:[#allocation8] sm:$0xff] %v354_v63 }
 0x1e9   :  { %v355_v0 = vpop.f32.mrf.mxu2 }
 0x1ea   :  { %v356_v1 = vadd.f32 %v519_v61, %v355_v0 }
 0x1ec   :  { %359 = vst [vmem:[#allocation8 + $0x8] sm:$0xff] %v356_v1 }
 0x1ed   :  { %372 = dma.vmem_to_hbm [thread:$0]  %s365_s21, 256, %s367_s24, [#allocation4], %s636_s25, %s636_s25, %s637_s26  }
 0x1ee   :  { %628 = dma.done.wait [#allocation4], 256  }
 0x1ef   :  { %629 = vsyncadd [#allocation4], 4294967040 }
 0x1f0   :  { %377 = vsyncpa [#allocation3], 1 }
 0x1f1   :  { %378 = vsyncpa [#allocation6], 1 }
 0x1f2   :  { %379 = vsyncpa [#allocation4], 1 }

</bundles_post_ra>
